<compile_context>
chip_gen: v6e
topology: v6e:2x2x1
jax: 0.10.0
libtpu: 0.0.40
codegen_flags: <defaults>
</compile_context>

<pallas_src>
import functools
import math

import jax
import jax.numpy as jnp
from jax.experimental import pallas as pl
from jax.experimental.pallas import tpu as pltpu


# ----------------------------- kernels ------------------------------------


def _pe_add_kernel(x_ref, emb_ref, o_ref):
    # x_ref: (Bb, TS, Dw)   emb_ref: (TS, Dw) broadcast over the batch block.
    y = x_ref[...] + emb_ref[...][None, :, :]
    o_ref[...] = y.astype(o_ref.dtype)


def _pe_add_prng_kernel(seed_ref, x_ref, emb_ref, o_ref, *, threshold24, inv_keep):
    # TPU dropout path: on-chip PRNG -> zero extra HBM traffic for the mask.
    # Sign-safe compare: bits masked to 24 bits, threshold < 2^24, so the
    # result is identical under signed or unsigned 32-bit lowering.
    y = x_ref[...] + emb_ref[...][None, :, :]
    flat_step = pl.program_id(0) * pl.num_programs(1) + pl.program_id(1)
    pltpu.prng_seed(seed_ref[0], flat_step)  # independent stream per grid point
    bits = pltpu.prng_random_bits(y.shape)
    if bits.dtype != jnp.uint32:
        bits = pltpu.bitcast(bits, jnp.uint32)
    keep = (bits & jnp.uint32(0x00FFFFFF)) < jnp.uint32(threshold24)
    o_ref[...] = jnp.where(keep, y * inv_keep, 0.0).astype(o_ref.dtype)


def _pe_add_mask_kernel(x_ref, emb_ref, mask_ref, o_ref, *, inv_keep):
    # Portable dropout path (off-TPU interpret): uint8 keep-mask streamed in.
    y = x_ref[...] + emb_ref[...][None, :, :]
    o_ref[...] = jnp.where(mask_ref[...] != 0, y * inv_keep, 0.0).astype(o_ref.dtype)


# ----------------------------- tiling ---------------------------------------

_TILE_BUDGET_BYTES = 4 * 1024 * 1024   # per x/out buffer (double-buffered by Pallas)
_VMEM_LIMIT_FLOOR = 16 * 1024 * 1024
_VMEM_LIMIT_CAP = 48 * 1024 * 1024     # headroom under v7x's 64 MiB physical VMEM


def _pick_tiles(batch, seq, row_bytes, budget):
    """Pick (Bb, TS) for an x block of shape (Bb, TS, Dw).

    TS is a multiple of 8 (ragged tail handled by a cdiv grid) or the full
    sequence length when it is < 8 (full-dim blocks are always legal).  Bb is
    only reduced below `batch` when even TS=8 at full batch blows the budget.
    """
    if seq <= 8:
        seq_cap = seq_step = seq
    else:
        seq_cap = (seq // 8) * 8
        seq_step = 8

    def best_ts(bb):
        per_row = max(1, bb * row_bytes)
        t = (budget // per_row) // seq_step * seq_step
        return int(max(seq_step, min(seq_cap, t)))

    bb = batch
    ts = best_ts(bb)
    if bb * ts * row_bytes > budget:
        bb = min(batch, max(1, int(budget // (seq_step * row_bytes))))
        ts = best_ts(bb)
    return bb, ts


# ----------------------------- wrapper ---------------------------------------


def learnable_pos_enc(x, emb_table, *, dropout_p=0.1, training=False, seed=0,
                      donate_x=False):
    """x: (B, S, D); emb_table: (max_len, D).  Returns dropout(x + emb_table[:S])."""
    B, S, D = x.shape
    max_len, d2 = emb_table.shape
    assert d2 == D and S <= max_len

    out_dtype = jnp.promote_types(x.dtype, emb_table.dtype)

    # Lane folding: when D is not a multiple of 128, fold adjacent sequence rows
    # into the lane axis so stores are full-width (unmasked vst).
    k = 1
    if D % 128 != 0:
        kk = 128 // math.gcd(D, 128)
        if S % kk == 0:
            k = kk
        # TODO(synk): for D < 128 with S % kk != 0 we still take the masked-store
        # path; padding D to 128 (or folding over B*S) would avoid it.
    Sw, Dw = S // k, D * k
    xw = x.reshape(B, Sw, Dw)  # contiguous reshape: no copy

    bb, ts = _pick_tiles(B, Sw, Dw * xw.dtype.itemsize, _TILE_BUDGET_BYTES)
    n_s = -(-Sw // ts)
    n_b = -(-B // bb)

    # v7x megacore: if everything landed in a single grid step but the problem
    # is big enough to matter, split so both TensorCores get work.
    if n_s * n_b == 1 and B * Sw * Dw * xw.dtype.itemsize >= (1 << 20):
        if B >= 2:
            bb = (B + 1) // 2
        elif Sw >= 16:
            ts = max(8, (((Sw + 1) // 2) + 7) // 8 * 8)
        n_s = -(-Sw // ts)
        n_b = -(-B // bb)

    # Positional-embedding operand: index the full table directly via the
    # BlockSpec whenever the block shape is legal for it (no emb_table[:S] copy).
    if k == 1 and ts % 8 == 0:
        embw = emb_table
    else:
        embw = emb_table[:S].reshape(Sw, Dw)

    x_spec = pl.BlockSpec((bb, ts, Dw), lambda s, b, *_: (b, s, 0))
    emb_spec = pl.BlockSpec((ts, Dw), lambda s, b, *_: (s, 0))  # resident across inner b
    out_spec = pl.BlockSpec((bb, ts, Dw), lambda s, b, *_: (b, s, 0))
    out_shape = jax.ShapeDtypeStruct((B, Sw, Dw), out_dtype)

    apply_dropout = training and dropout_p > 0.0
    keep_prob = 1.0 - float(dropout_p)
    use_prng = apply_dropout and jax.default_backend() == "tpu"
    use_mask = apply_dropout and not use_prng

    # Explicit VMEM limit: double-buffered x/out/emb (+ uint8 mask in the
    # fallback path) can exceed the default scoped limits (16 MiB on v5e,
    # 32 MiB on v6e/v7x).
    x_blk = bb * ts * Dw * xw.dtype.itemsize
    o_blk = bb * ts * Dw * jnp.dtype(out_dtype).itemsize
    e_blk = ts * Dw * emb_table.dtype.itemsize
    m_blk = bb * ts * Dw if use_mask else 0
    need = 2 * (x_blk + o_blk + e_blk + m_blk)
    vmem_limit = int(min(max(need * 3 // 2, _VMEM_LIMIT_FLOOR), _VMEM_LIMIT_CAP))

    cparams = pltpu.CompilerParams(
        dimension_semantics=("parallel", "parallel"),
        vmem_limit_bytes=vmem_limit,
    )

    if not apply_dropout:
        io_aliases = {0: 0} if (donate_x and out_dtype == xw.dtype) else {}
        out = pl.pallas_call(
            _pe_add_kernel,
            out_shape=out_shape,
            grid_spec=pltpu.PrefetchScalarGridSpec(
                num_scalar_prefetch=0,
                grid=(n_s, n_b),
                in_specs=[x_spec, emb_spec],
                out_specs=out_spec,
            ),
            compiler_params=cparams,
            input_output_aliases=io_aliases,
        )(xw, embw)
    elif use_prng:
        # TODO(synk): wire input_output_aliases here too for callers donating x
        # (x is operand index 1 in this call because of the scalar-prefetch seed).
        threshold24 = int(round(keep_prob * float(1 << 24)))
        kern = functools.partial(
            _pe_add_prng_kernel, threshold24=threshold24, inv_keep=1.0 / keep_prob
        )
        out = pl.pallas_call(
            kern,
            out_shape=out_shape,
            grid_spec=pltpu.PrefetchScalarGridSpec(
                num_scalar_prefetch=1,
                grid=(n_s, n_b),
                in_specs=[x_spec, emb_spec],
                out_specs=out_spec,
            ),
            compiler_params=cparams,
        )(jnp.array([seed], jnp.int32), xw, embw)
    else:
        # pltpu.prng_* has no lowering off-TPU (interpret mode): stream a uint8
        # keep-mask (4x less extra HBM read than a full-dtype scale) and apply
        # the inverted-dropout scale in-kernel.
        keep = jax.random.bernoulli(
            jax.random.PRNGKey(seed), p=keep_prob, shape=(B, Sw, Dw)
        ).astype(jnp.uint8)
        mask_spec = pl.BlockSpec((bb, ts, Dw), lambda s, b, *_: (b, s, 0))
        kern = functools.partial(_pe_add_mask_kernel, inv_keep=1.0 / keep_prob)
        out = pl.pallas_call(
            kern,
            out_shape=out_shape,
            grid_spec=pltpu.PrefetchScalarGridSpec(
                num_scalar_prefetch=0,
                grid=(n_s, n_b),
                in_specs=[x_spec, emb_spec, mask_spec],
                out_specs=out_spec,
            ),
            compiler_params=cparams,
        )(xw, embw, keep)

    return out.reshape(B, S, D)


# ------------------------------- demo ----------------------------------------

if __name__ == "__main__":
    key = jax.random.PRNGKey(0)
    k_x, k_emb = jax.random.split(key)

    B, S, D = 2, 8, 32
    MAX_LEN = 16  # small stand-in for max_len=5000

    x = jax.random.normal(k_x, (B, S, D), dtype=jnp.float32)
    emb_table = jax.random.normal(k_emb, (MAX_LEN, D), dtype=jnp.float32)

    # Eval mode (dropout is identity) -> deterministic, checkable.
    out = jax.block_until_ready(
        learnable_pos_enc(x, emb_table, dropout_p=0.1, training=False)
    )
    ref = x + emb_table[:S][None, :, :]
    assert jnp.allclose(out, ref, atol=1e-5, rtol=1e-5), "mismatch vs reference"

    # Training mode: every element must be 0 (dropped) or (x+pe)/keep_prob (kept),
    # and the keep fraction must be near keep_prob (catches a signed-compare bug).
    keep_prob = 0.9
    out_tr = jax.block_until_ready(
        learnable_pos_enc(x, emb_table, dropout_p=0.1, training=True, seed=123)
    )
    assert out_tr.shape == (B, S, D)
    scaled = ref * (1.0 / keep_prob)
    ok_vals = jnp.all(
        jnp.isclose(out_tr, 0.0, atol=1e-6)
        | jnp.isclose(out_tr, scaled, atol=1e-4, rtol=1e-4)
    )
    assert bool(ok_vals), "dropout output is not {0, (x+pe)/keep_prob}"
    frac_kept = jnp.mean((jnp.abs(out_tr) > 1e-6).astype(jnp.float32))
    assert 0.7 < float(frac_kept) <= 1.0, f"keep fraction {float(frac_kept)} off"

    print("KERNEL_OK")
</pallas_src>

<mosaic_0001>
module attributes {stable_mosaic.version = 11 : i64} {
  func.func @_pe_add_kernel(%arg0: i32, %arg1: i32, %arg2: memref<2x2x128xf32, #tpu.memory_space<vmem>>, %arg3: memref<2x128xf32, #tpu.memory_space<vmem>>, %arg4: memref<2x2x128xf32, #tpu.memory_space<vmem>>) attributes {dimension_semantics = [#tpu.dimension_semantics<parallel>, #tpu.dimension_semantics<parallel>], iteration_bounds = array<i64: 1, 1>, scalar_prefetch = 0 : i64, scratch_operands = 0 : i64, tpu.core_type = #tpu.core_type<tc>, window_params = [{transform_indices = @transform_0, window_bounds = array<i64: 2, 2, 128>}, {transform_indices = @transform_1, window_bounds = array<i64: 2, 128>}, {transform_indices = @transform_2, window_bounds = array<i64: 2, 2, 128>}]} {
    %c0 = arith.constant 0 : index
    %c0_0 = arith.constant 0 : index
    %c0_1 = arith.constant 0 : index
    %0 = vector.load %arg2[%c0, %c0_0, %c0_1] : memref<2x2x128xf32, #tpu.memory_space<vmem>>, vector<2x2x128xf32>
    %c0_2 = arith.constant 0 : index
    %c0_3 = arith.constant 0 : index
    %1 = vector.load %arg3[%c0_2, %c0_3] : memref<2x128xf32, #tpu.memory_space<vmem>>, vector<2x128xf32>
    %2 = vector.shape_cast %1 : vector<2x128xf32> to vector<1x2x128xf32>
    %3 = vector.broadcast %2 : vector<1x2x128xf32> to vector<2x2x128xf32>
    %4 = arith.addf %0, %3 : vector<2x2x128xf32>
    %c0_4 = arith.constant 0 : index
    %c0_5 = arith.constant 0 : index
    %c0_6 = arith.constant 0 : index
    %5 = vector.load %arg4[%c0_4, %c0_5, %c0_6] : memref<2x2x128xf32, #tpu.memory_space<vmem>>, vector<2x2x128xf32>
    tpu.vector_store %arg4[%c0_4, %c0_5, %c0_6], %4 {strides = array<i32>} : memref<2x2x128xf32, #tpu.memory_space<vmem>>, vector<2x2x128xf32>,
    return
  }
  func.func @transform_0(%arg0: i32, %arg1: i32) -> (i32, i32, i32) {
    %c0_i32 = arith.constant 0 : i32
    %c0_i32_0 = arith.constant 0 : i32
    return %arg1, %arg0, %c0_i32 : i32, i32, i32
  }
  func.func @transform_1(%arg0: i32, %arg1: i32) -> (i32, i32) {
    %c0_i32 = arith.constant 0 : i32
    %c0_i32_0 = arith.constant 0 : i32
    return %arg0, %c0_i32 : i32, i32
  }
  func.func @transform_2(%arg0: i32, %arg1: i32) -> (i32, i32, i32) {
    %c0_i32 = arith.constant 0 : i32
    %c0_i32_0 = arith.constant 0 : i32
    return %arg1, %arg0, %c0_i32 : i32, i32, i32
  }
}

</mosaic_0001>

<bundles_post_ra>
// kernel: tpu_custom_call.1
= control target key start
LH: loop header
LB: loop body
LE: loop exit
PB: predicated region body
PF: predicated region fallthrough
CT: control target
= control target key end

     0   :  { %7 = vsyncpa [#allocation3], 0  ;;  %s169_s0 = inlined_call_operand.hbm [shape: f32[2,2,128], index: 0, kind: input, shape index: {}]   ;;  %s170_s1 = inlined_call_operand.hbm [shape: f32[2,128], index: 1, kind: input, shape index: {}]   ;;  %s171_s2 = inlined_call_operand.hbm [shape: f32[2,2,128], index: 2, kind: output, shape index: {}]  }
   0x1   :  { %8 = vsyncpa [#allocation6], 0 }
   0x2   :  { %9 = vsyncpa [#allocation4], 0  ;;  %s134_s9 = smov [#allocation2]  }
   0x3   :  { %s15_s10 = sshll.u32 %s134_s9, 4  ;;  %s16_s10 = int_to_ptr.vmem [resolvable:$true] %s15_s10 }
   0x4   :  { %s76_s11 = scalar_lea.vmem %s16_s10, 64  ;;  %p81_p1 = scmp.lt.s32.totalorder %s16_s10, %s16_s10 }
   0x5   :  { %p77_p0 = scmp.ne.s32.totalorder %s16_s10, %s76_s11  ;;  %p82_p2 = scmp.lt.s32.totalorder %s76_s11, %s76_s11 }
   0x7   :  { %p83_p3 = por %p82_p2, %p81_p1 }
   0x9   :  { %p84_p4 = pnand %p83_p3, %p77_p0 }
   0xb   :  { %87 = shalt.err (!%p84_p4)
}
   0xc   :  { %s135_s12 = smov 32   ;;  %s136_s13 = smov 2  }
   0xd   :  { %21 = dma.hbm_to_vmem [thread:$0]  %s169_s0, 64, %s16_s10, [#allocation3], %s135_s12, %s135_s12, %s136_s13  }
   0xe   :  { %s137_s16 = smov [#allocation5]  }
   0xf   :  { %s28_s17 = sshll.u32 %s137_s16, 4  ;;  %s29_s17 = int_to_ptr.vmem [resolvable:$true] %s28_s17 }
  0x10   :  { %s96_s18 = scalar_lea.vmem %s29_s17, 32  ;;  %p101_p6 = scmp.lt.s32.totalorder %s29_s17, %s29_s17 }
  0x11   :  { %p97_p5 = scmp.ne.s32.totalorder %s29_s17, %s96_s18  ;;  %p102_p7 = scmp.lt.s32.totalorder %s96_s18, %s96_s18 }
  0x13   :  { %p103_p8 = por %p102_p7, %p101_p6 }
  0x15   :  { %p104_p9 = pnand %p103_p8, %p97_p5 }
  0x17   :  { %107 = shalt.err (!%p104_p9)
}
  0x18   :  { %31 = dma.hbm_to_vmem [thread:$0]  %s170_s1, 32, %s29_s17, [#allocation6]  }
  0x19   :  { %128 = dma.done.wait [#allocation3], 64  }
  0x1a   :  { %129 = vsyncadd [#allocation3], 4294967232 }
  0x1b   :  { %130 = dma.done.wait [#allocation6], 32  }
  0x1c   :  { %131 = vsyncadd [#allocation6], 4294967264  ;;  %s138_s21 = smov [#allocation7]   ;;  %v38_v0 = vld [vmem:[#allocation2] sm:$0x3] }
  0x1d   :  { %s50_s0 = sshll.u32 %s138_s21, 4  ;;  %v40_v1 = vld [vmem:[#allocation5] sm:$0x3]  ;;  %v39_v2 = vld [vmem:[#allocation2 + $0x2] sm:$0x3]  ;;  %s51_s0 = int_to_ptr.vmem [resolvable:$true] %s50_s0 }
  0x1e   :  { %v41_v3 = vadd.f32 %v40_v1, %v38_v0  ;;  %v42_v4 = vadd.f32 %v40_v1, %v39_v2  ;;  %s108_s22 = scalar_lea.vmem %s51_s0, 64  ;;  %p113_p11 = scmp.lt.s32.totalorder %s51_s0, %s51_s0 }
  0x1f   :  { %p109_p10 = scmp.ne.s32.totalorder %s51_s0, %s108_s22  ;;  %p114_p12 = scmp.lt.s32.totalorder %s108_s22, %s108_s22 }
  0x20   :  { %43 = vst [vmem:[#allocation7] sm:$0x3] %v41_v3  ;;  %44 = vst [vmem:[#allocation7 + $0x2] sm:$0x3] %v42_v4 }
  0x21   :  { %p115_p13 = por %p114_p12, %p113_p11 }
  0x23   :  { %p116_p0 = pnand %p115_p13, %p109_p10 }
  0x25   :  { %119 = shalt.err (!%p116_p0)
}
  0x26   :  { %56 = dma.vmem_to_hbm [thread:$0]  %s51_s0, 64, %s171_s2, [#allocation4], %s135_s12, %s135_s12, %s136_s13  }
  0x27   :  { %132 = dma.done.wait [#allocation4], 64  }
  0x28   :  { %133 = vsyncadd [#allocation4], 4294967232 }
  0x29   :  { %60 = vsyncpa [#allocation3], 1 }
  0x2a   :  { %61 = vsyncpa [#allocation6], 1 }
  0x2b   :  { %62 = vsyncpa [#allocation4], 1 }

</bundles_post_ra>
